<compile_context>
chip_gen: v7x
topology: tpu7x:2x2x1
jax: 0.10.0
libtpu: 0.0.40
codegen_flags: <defaults>
</compile_context>

<pallas_src>
import functools
import math

import jax
import jax.numpy as jnp
from jax import lax
from jax.experimental import pallas as pl
from jax.experimental.pallas import tpu as pltpu


def _round_up(x, m):
    return (x + m - 1) // m * m


def _gelu(x, *, approximate=False):
    if approximate:
        # tanh approximation: runs on the EUP (separate bundle slot) -> frees the VALU.
        c = math.sqrt(2.0 / math.pi)
        return 0.5 * x * (1.0 + jnp.tanh(c * (x + 0.044715 * x * x * x)))
    # Exact erf-based GELU: matches PyTorch F.gelu default.
    return 0.5 * x * (1.0 + lax.erf(x * (1.0 / math.sqrt(2.0))))


def _vmem_capacity_bytes():
    try:
        return int(pltpu.get_tpu_info().vmem_capacity_bytes)
    except Exception:
        return 128 * 2**20  # v5e/v6e-class default


def prepare_params(w1, b1, w2, b2):
    """One-time (init-time) lane-dense padding + bf16 cast of the MLP parameters.

    w1: (hidden, inter), w2: (inter, hidden) -- i.e. nn.Linear weights stored as (in, out).
    Hoisted out of the per-call hot path so the forward pass never re-reads/casts weights.
    """
    hidden, inter = w1.shape
    hidden_p = _round_up(hidden, 128)
    inter_p = _round_up(inter, 128)
    # Zero padding of weight rows/cols contributes nothing to the matmuls.
    w1_p = jnp.pad(w1, ((0, hidden_p - hidden), (0, inter_p - inter))).astype(jnp.bfloat16)
    w2_p = jnp.pad(w2, ((0, inter_p - inter), (0, hidden_p - hidden))).astype(jnp.bfloat16)
    b1_p = jnp.pad(b1.reshape(1, inter).astype(jnp.float32), ((0, 0), (0, inter_p - inter)))
    b2_p = jnp.pad(b2.reshape(1, hidden).astype(jnp.float32), ((0, 0), (0, hidden_p - hidden)))
    return dict(w1=w1_p, b1=b1_p, w2=w2_p, b2=b2_p, hidden=hidden, inter=inter)


def _mlp_resident_kernel(x_ref, w1_ref, b1_ref, w2_ref, b2_ref, o_ref, *, approximate_gelu):
    # x_ref:  (tm, hidden_p) bf16      w1_ref: (hidden_p, inter_p) bf16 (VMEM-resident)
    # b1_ref: (1, inter_p)   f32       w2_ref: (inter_p, hidden_p) bf16 (VMEM-resident)
    # b2_ref: (1, hidden_p)  f32       o_ref:  (tm, hidden_p) out dtype
    h = jnp.dot(x_ref[...], w1_ref[...], preferred_element_type=jnp.float32)
    h = _gelu(h + b1_ref[...], approximate=approximate_gelu)
    y = jnp.dot(h.astype(jnp.bfloat16), w2_ref[...], preferred_element_type=jnp.float32)
    o_ref[...] = (y + b2_ref[...]).astype(o_ref.dtype)


def _mlp_streamed_kernel(x_ref, w1_ref, b1_ref, w2_ref, b2_ref, o_ref, acc_ref,
                         *, approximate_gelu):
    # Fallback for weights too large to keep resident: reduce over inter-tiles (axis 1).
    n = pl.program_id(1)

    @pl.when(n == 0)
    def _():
        acc_ref[...] = jnp.zeros_like(acc_ref)

    h = jnp.dot(x_ref[...], w1_ref[...], preferred_element_type=jnp.float32)
    h = _gelu(h + b1_ref[...], approximate=approximate_gelu)
    acc_ref[...] += jnp.dot(h.astype(jnp.bfloat16), w2_ref[...],
                            preferred_element_type=jnp.float32)

    @pl.when(n == pl.num_programs(1) - 1)
    def _():
        o_ref[...] = (acc_ref[...] + b2_ref[...]).astype(o_ref.dtype)


def audio_mlp(x, params, *, tm=None, approximate_gelu=False):
    """x: (batch, seq, hidden); params from prepare_params().  Returns (batch, seq, hidden).

    fc1 -> GELU -> fc2; dropout is identity (eval mode).  Matmuls run in bf16 with f32
    accumulation.  GELU is exact (erf) by default to match torch.nn.functional.gelu.
    """
    batch, seq, hidden = x.shape
    assert hidden == params["hidden"], "hidden dim mismatch with prepared params"
    w1_p, b1_p, w2_p, b2_p = params["w1"], params["b1"], params["w2"], params["b2"]
    hidden_p, inter_p = w1_p.shape
    out_dtype = x.dtype
    out_bytes = jnp.dtype(out_dtype).itemsize
    M = batch * seq

    # Generation-aware knobs (64 MiB VMEM / 2 TCs -> v7x-class; 128 MiB -> v5e/v6e-class).
    vmem_cap = _vmem_capacity_bytes()
    vmem_budget = int(0.72 * vmem_cap)          # never request the full physical VMEM
    small_vmem = vmem_cap <= 64 * 2**20
    if tm is None:
        tm = 512 if small_vmem else 1024

    def _resident_vmem(tm_):
        return (hidden_p * inter_p * 2 * 2          # W1 + W2 (bf16, single-buffered)
                + (inter_p + hidden_p) * 4          # biases (f32)
                + 2 * tm_ * hidden_p * 2            # x tile (bf16, double-buffered)
                + 2 * tm_ * hidden_p * out_bytes    # out tile (double-buffered)
                + tm_ * inter_p * 6)                # f32 intermediate h + bf16 recast

    tm_res = tm
    while tm_res > 64 and _resident_vmem(tm_res) > vmem_budget:
        tm_res //= 2
    use_resident = _resident_vmem(tm_res) <= vmem_budget
    tm_use = tm_res if use_resident else min(tm, 256)

    # Balanced, 16-aligned m tiles (bf16 packs 16 rows per sublane group); keep >= 2
    # m-tiles on 2-TensorCore parts when M allows so both cores get work.
    tm_cap = max(16, min(tm_use, _round_up(M, 16)))
    min_tiles = 2 if (small_vmem and M >= 32) else 1
    num_tiles = max(pl.cdiv(M, tm_cap), min_tiles)
    tm_eff = max(16, _round_up(pl.cdiv(M, num_tiles), 16))
    M_p = _round_up(M, tm_eff)
    num_m = M_p // tm_eff

    # Per-call input prep (weights already prepared): pad M + lane dims, cast to bf16.
    x2d = jnp.pad(x.reshape(M, hidden),
                  ((0, M_p - M), (0, hidden_p - hidden))).astype(jnp.bfloat16)

    if use_resident:
        kernel = functools.partial(_mlp_resident_kernel, approximate_gelu=approximate_gelu)
        cost = pl.CostEstimate(
            flops=4 * M_p * hidden_p * inter_p,
            transcendentals=M_p * inter_p,
            bytes_accessed=(x2d.size * 2 + w1_p.size * 2 + w2_p.size * 2
                            + b1_p.size * 4 + b2_p.size * 4 + M_p * hidden_p * out_bytes),
        )
        out = pl.pallas_call(
            kernel,
            out_shape=jax.ShapeDtypeStruct((M_p, hidden_p), out_dtype),
            grid_spec=pltpu.PrefetchScalarGridSpec(
                num_scalar_prefetch=0,
                grid=(num_m,),
                in_specs=[
                    pl.BlockSpec((tm_eff, hidden_p), lambda i: (i, 0)),
                    # Constant index_map + Buffered(1): fetched once, single VMEM buffer.
                    pl.BlockSpec((hidden_p, inter_p), lambda i: (0, 0),
                                 pipeline_mode=pl.Buffered(1)),
                    pl.BlockSpec((1, inter_p), lambda i: (0, 0),
                                 pipeline_mode=pl.Buffered(1)),
                    pl.BlockSpec((inter_p, hidden_p), lambda i: (0, 0),
                                 pipeline_mode=pl.Buffered(1)),
                    pl.BlockSpec((1, hidden_p), lambda i: (0, 0),
                                 pipeline_mode=pl.Buffered(1)),
                ],
                out_specs=pl.BlockSpec((tm_eff, hidden_p), lambda i: (i, 0)),
            ),
            compiler_params=pltpu.CompilerParams(
                dimension_semantics=("parallel",),
                vmem_limit_bytes=vmem_budget,
            ),
            cost_estimate=cost,
        )(x2d, w1_p, b1_p, w2_p, b2_p)
    else:
        # Streamed-weights fallback (weights larger than VMEM budget): 2-D grid with an
        # f32 accumulator over the inter axis.  tn chosen to divide inter_p exactly.
        tn = 512 if inter_p % 512 == 0 else (256 if inter_p % 256 == 0 else 128)
        num_n = inter_p // tn
        kernel = functools.partial(_mlp_streamed_kernel, approximate_gelu=approximate_gelu)
        cost = pl.CostEstimate(
            flops=4 * M_p * hidden_p * inter_p,
            transcendentals=M_p * inter_p,
            bytes_accessed=(x2d.size * 2
                            + num_m * (w1_p.size * 2 + w2_p.size * 2 + b1_p.size * 4)
                            + b2_p.size * 4 + M_p * hidden_p * out_bytes),
        )
        out = pl.pallas_call(
            kernel,
            out_shape=jax.ShapeDtypeStruct((M_p, hidden_p), out_dtype),
            grid_spec=pltpu.PrefetchScalarGridSpec(
                num_scalar_prefetch=0,
                grid=(num_m, num_n),
                in_specs=[
                    pl.BlockSpec((tm_eff, hidden_p), lambda i, n: (i, 0)),
                    pl.BlockSpec((hidden_p, tn), lambda i, n: (0, n)),
                    pl.BlockSpec((1, tn), lambda i, n: (0, n)),
                    pl.BlockSpec((tn, hidden_p), lambda i, n: (n, 0)),
                    pl.BlockSpec((1, hidden_p), lambda i, n: (0, 0)),
                ],
                out_specs=pl.BlockSpec((tm_eff, hidden_p), lambda i, n: (i, 0)),
                scratch_shapes=[pltpu.VMEM((tm_eff, hidden_p), jnp.float32)],
            ),
            compiler_params=pltpu.CompilerParams(
                dimension_semantics=("parallel", "arbitrary"),
                vmem_limit_bytes=vmem_budget,
            ),
            cost_estimate=cost,
        )(x2d, w1_p, b1_p, w2_p, b2_p)

    return out[:M, :hidden].reshape(batch, seq, hidden)


def reference_mlp(x, w1, b1, w2, b2):
    h = x @ w1 + b1
    h = _gelu(h, approximate=False)
    return h @ w2 + b2


if __name__ == "__main__":
    # Small config consistent with the module: hidden=32, inter=64, batch=2, seq=8.
    batch, seq = 2, 8
    hidden_dim, inter_dim = 32, 64

    key = jax.random.PRNGKey(0)
    kx, kw1, kb1, kw2, kb2 = jax.random.split(key, 5)

    x = jax.random.normal(kx, (batch, seq, hidden_dim), dtype=jnp.float32)

    # nn.Linear shapes: fc1 (inter, hidden), fc2 (hidden, inter); stored transposed
    # as (in, out) for the kernel.
    bound1 = 1.0 / math.sqrt(hidden_dim)
    w1 = jax.random.uniform(kw1, (hidden_dim, inter_dim), jnp.float32, -bound1, bound1)
    b1 = jax.random.uniform(kb1, (inter_dim,), jnp.float32, -bound1, bound1)
    bound2 = 1.0 / math.sqrt(inter_dim)
    w2 = jax.random.uniform(kw2, (inter_dim, hidden_dim), jnp.float32, -bound2, bound2)
    b2 = jax.random.uniform(kb2, (hidden_dim,), jnp.float32, -bound2, bound2)

    # One-time parameter prep (pad + bf16 cast hoisted out of the forward hot path).
    params = prepare_params(w1, b1, w2, b2)

    out = audio_mlp(x, params)
    out = jax.block_until_ready(out)

    ref = reference_mlp(x, w1, b1.reshape(1, 1, -1), w2, b2.reshape(1, 1, -1))
    assert out.shape == (batch, seq, hidden_dim)
    # bf16 MXU operands with f32 accumulation -> relaxed tolerance vs the f32 reference.
    assert jnp.allclose(out, ref, atol=2e-2, rtol=2e-2), "mismatch vs reference"

    print("KERNEL_OK")
</pallas_src>

<mosaic_0001>
module attributes {stable_mosaic.version = 11 : i64} {
  func.func @_mlp_resident_kernel(%arg0: i32, %arg1: memref<16x128xbf16, #tpu.memory_space<vmem>>, %arg2: memref<128x128xbf16, #tpu.memory_space<vmem>>, %arg3: memref<1x128xf32, #tpu.memory_space<vmem>>, %arg4: memref<128x128xbf16, #tpu.memory_space<vmem>>, %arg5: memref<1x128xf32, #tpu.memory_space<vmem>>, %arg6: memref<16x128xf32, #tpu.memory_space<vmem>>) attributes {dimension_semantics = [#tpu.dimension_semantics<parallel>], iteration_bounds = array<i64: 1>, scalar_prefetch = 0 : i64, scratch_operands = 0 : i64, tpu.core_type = #tpu.core_type<tc>, window_params = [{transform_indices = @transform_0, window_bounds = array<i64: 16, 128>}, {pipeline_mode = #tpu.pipeline_mode<synchronous>, transform_indices = @transform_1, window_bounds = array<i64: 128, 128>}, {pipeline_mode = #tpu.pipeline_mode<synchronous>, transform_indices = @transform_2, window_bounds = array<i64: 1, 128>}, {pipeline_mode = #tpu.pipeline_mode<synchronous>, transform_indices = @transform_3, window_bounds = array<i64: 128, 128>}, {pipeline_mode = #tpu.pipeline_mode<synchronous>, transform_indices = @transform_4, window_bounds = array<i64: 1, 128>}, {transform_indices = @transform_5, window_bounds = array<i64: 16, 128>}]} {
    %c0 = arith.constant 0 : index
    %c0_0 = arith.constant 0 : index
    %0 = vector.load %arg1[%c0, %c0_0] : memref<16x128xbf16, #tpu.memory_space<vmem>>, vector<16x128xbf16>
    %c0_1 = arith.constant 0 : index
    %c0_2 = arith.constant 0 : index
    %1 = vector.load %arg2[%c0_1, %c0_2] : memref<128x128xbf16, #tpu.memory_space<vmem>>, vector<128x128xbf16>
    %cst = arith.constant dense<0.000000e+00> : vector<16x128xf32>
    %2 = tpu.matmul %0, %1, %cst {dimension_numbers = #tpu.dot_dimension_numbers<[1], [0], [0], [1], [0, 0, 1, 1], [], []>} : vector<16x128xbf16>, vector<128x128xbf16>, vector<16x128xf32> -> vector<16x128xf32>
    %c0_3 = arith.constant 0 : index
    %c0_4 = arith.constant 0 : index
    %3 = vector.load %arg3[%c0_3, %c0_4] : memref<1x128xf32, #tpu.memory_space<vmem>>, vector<1x128xf32>
    %4 = vector.broadcast %3 : vector<1x128xf32> to vector<16x128xf32>
    %5 = arith.addf %2, %4 : vector<16x128xf32>
    %cst_5 = arith.constant 5.000000e-01 : f32
    %6 = vector.broadcast %cst_5 : f32 to vector<16x128xf32>
    %7 = arith.mulf %6, %5 : vector<16x128xf32>
    %cst_6 = arith.constant 0.707106769 : f32
    %8 = vector.broadcast %cst_6 : f32 to vector<16x128xf32>
    %9 = arith.mulf %5, %8 : vector<16x128xf32>
    %10 = math.erf %9 : vector<16x128xf32>
    %cst_7 = arith.constant 1.000000e+00 : f32
    %11 = vector.broadcast %cst_7 : f32 to vector<16x128xf32>
    %12 = arith.addf %11, %10 : vector<16x128xf32>
    %13 = arith.mulf %7, %12 : vector<16x128xf32>
    %14 = arith.truncf %13 : vector<16x128xf32> to vector<16x128xbf16>
    %c0_8 = arith.constant 0 : index
    %c0_9 = arith.constant 0 : index
    %15 = vector.load %arg4[%c0_8, %c0_9] : memref<128x128xbf16, #tpu.memory_space<vmem>>, vector<128x128xbf16>
    %cst_10 = arith.constant dense<0.000000e+00> : vector<16x128xf32>
    %16 = tpu.matmul %14, %15, %cst_10 {dimension_numbers = #tpu.dot_dimension_numbers<[1], [0], [0], [1], [0, 0, 1, 1], [], []>} : vector<16x128xbf16>, vector<128x128xbf16>, vector<16x128xf32> -> vector<16x128xf32>
    %c0_11 = arith.constant 0 : index
    %c0_12 = arith.constant 0 : index
    %17 = vector.load %arg5[%c0_11, %c0_12] : memref<1x128xf32, #tpu.memory_space<vmem>>, vector<1x128xf32>
    %18 = vector.broadcast %17 : vector<1x128xf32> to vector<16x128xf32>
    %19 = arith.addf %16, %18 : vector<16x128xf32>
    %c0_13 = arith.constant 0 : index
    %c0_14 = arith.constant 0 : index
    %20 = vector.load %arg6[%c0_13, %c0_14] : memref<16x128xf32, #tpu.memory_space<vmem>>, vector<16x128xf32>
    tpu.vector_store %arg6[%c0_13, %c0_14], %19 {strides = array<i32>} : memref<16x128xf32, #tpu.memory_space<vmem>>, vector<16x128xf32>,
    return
  }
  func.func @transform_0(%arg0: i32) -> (i32, i32) {
    %c0_i32 = arith.constant 0 : i32
    %c0_i32_0 = arith.constant 0 : i32
    return %arg0, %c0_i32 : i32, i32
  }
  func.func @transform_1(%arg0: i32) -> (i32, i32) {
    %c0_i32 = arith.constant 0 : i32
    %c0_i32_0 = arith.constant 0 : i32
    %c0_i32_1 = arith.constant 0 : i32
    return %c0_i32, %c0_i32_0 : i32, i32
  }
  func.func @transform_2(%arg0: i32) -> (i32, i32) {
    %c0_i32 = arith.constant 0 : i32
    %c0_i32_0 = arith.constant 0 : i32
    %c0_i32_1 = arith.constant 0 : i32
    return %c0_i32, %c0_i32_0 : i32, i32
  }
  func.func @transform_3(%arg0: i32) -> (i32, i32) {
    %c0_i32 = arith.constant 0 : i32
    %c0_i32_0 = arith.constant 0 : i32
    %c0_i32_1 = arith.constant 0 : i32
    return %c0_i32, %c0_i32_0 : i32, i32
  }
  func.func @transform_4(%arg0: i32) -> (i32, i32) {
    %c0_i32 = arith.constant 0 : i32
    %c0_i32_0 = arith.constant 0 : i32
    %c0_i32_1 = arith.constant 0 : i32
    return %c0_i32, %c0_i32_0 : i32, i32
  }
  func.func @transform_5(%arg0: i32) -> (i32, i32) {
    %c0_i32 = arith.constant 0 : i32
    %c0_i32_0 = arith.constant 0 : i32
    return %arg0, %c0_i32 : i32, i32
  }
}

</mosaic_0001>

<bundles_post_ra>
// kernel: tpu_custom_call.1
= control target key start
LH: loop header
LB: loop body
LE: loop exit
PB: predicated region body
PF: predicated region fallthrough
CT: control target
= control target key end

     0   :  { %10 = vsyncpa [#allocation3], 0  ;;  %s730_s0 = inlined_call_operand.hbm [shape: bf16[16,128], index: 0, kind: input, shape index: {}]   ;;  %s731_s1 = inlined_call_operand.hbm [shape: bf16[128,128], index: 1, kind: input, shape index: {}]   ;;  %s732_s2 = inlined_call_operand.hbm [shape: f32[1,128], index: 2, kind: input, shape index: {}]   ;;  %s733_s3 = inlined_call_operand.hbm [shape: bf16[128,128], index: 3, kind: input, shape index: {}]   ;;  %s734_s4 = inlined_call_operand.hbm [shape: f32[1,128], index: 4, kind: input, shape index: {}]   ;;  %s735_s5 = inlined_call_operand.hbm [shape: f32[16,128], index: 5, kind: output, shape index: {}]  }
   0x1   :  { %11 = vsyncpa [#allocation6], 0 }
   0x2   :  { %12 = vsyncpa [#allocation9], 0 }
   0x3   :  { %13 = vsyncpa [#allocation4], 0  ;;  %s600_s18 = smov [#allocation5]   ;;  %s601_s20 = smov [#allocation8]  }
   0x4   :  { %s31_s19 = sshll.u32 %s600_s18, 4  ;;  %s53_s21 = sshll.u32 %s601_s20, 4  ;;  %s32_s19 = int_to_ptr.vmem [resolvable:$true] %s31_s19  ;;  %s642_s21 = int_to_ptr.vmem [resolvable:$true] %s53_s21 }
   0x5   :  { %s460_s24 = scalar_lea.hbm %s731_s1, 1024 }
   0x6   :  { %p461_p0 = scmp.ne.s32.totalorder %s731_s1, %s460_s24  ;;  %p464_p1 = scmp.lt.u32.totalorder %s460_s24, %s731_s1 }
   0x8   :  { %p466_p2 = pnand %p464_p1, %p461_p0 }
   0xa   :  { %469 = shalt.err (!%p466_p2)
}
   0xb   :  { %s470_s29 = scalar_lea.vmem %s32_s19, 1024  ;;  %p475_p4 = scmp.lt.s32.totalorder %s32_s19, %s32_s19 }
   0xc   :  { %p471_p3 = scmp.ne.s32.totalorder %s32_s19, %s470_s29  ;;  %p476_p5 = scmp.lt.s32.totalorder %s470_s29, %s470_s29 }
   0xe   :  { %p477_p6 = por %p476_p5, %p475_p4 }
  0x10   :  { %p478_p7 = pnand %p477_p6, %p471_p3 }
  0x12   :  { %481 = shalt.err (!%p478_p7)
}
  0x13   :  { %s602_s30 = smov 64   ;;  %s603_s6 = smov 4  }
  0x14   :  { %37 = dma.hbm_to_vmem [thread:$0]  %s731_s1, 1024, %s32_s19, [#allocation6], %s602_s30, %s602_s30, %s603_s6  }
  0x15   :  { %s482_s11 = scalar_lea.hbm %s733_s3, 1024 }
  0x16   :  { %p483_p8 = scmp.ne.s32.totalorder %s733_s3, %s482_s11  ;;  %p486_p9 = scmp.lt.u32.totalorder %s482_s11, %s733_s3 }
  0x18   :  { %p488_p10 = pnand %p486_p9, %p483_p8 }
  0x1a   :  { %491 = shalt.err (!%p488_p10)
}
  0x1b   :  { %s492_s16 = scalar_lea.vmem %s642_s21, 1024  ;;  %p497_p12 = scmp.lt.s32.totalorder %s642_s21, %s642_s21 }
  0x1c   :  { %p493_p11 = scmp.ne.s32.totalorder %s642_s21, %s492_s16  ;;  %p498_p13 = scmp.lt.s32.totalorder %s492_s16, %s492_s16 }
  0x1e   :  { %p499_p0 = por %p498_p13, %p497_p12 }
  0x20   :  { %p500_p1 = pnand %p499_p0, %p493_p11 }
  0x22   :  { %503 = shalt.err (!%p500_p1)
}
  0x23   :  { %59 = dma.hbm_to_vmem [thread:$0]  %s733_s3, 1024, %s642_s21, [#allocation9], %s602_s30, %s602_s30, %s603_s6  }
  0x24   :  { %s604_s18 = smov [#allocation2]   ;;  %s605_s20 = smov [#allocation7]  }
  0x25   :  { %s19_s19 = sshll.u32 %s604_s18, 4  ;;  %s44_s22 = sshll.u32 %s605_s20, 4  ;;  %s20_s19 = int_to_ptr.vmem [resolvable:$true] %s19_s19  ;;  %s45_s22 = int_to_ptr.vmem [resolvable:$true] %s44_s22 }
  0x26   :  { %s504_s25 = scalar_lea.hbm %s730_s0, 128 }
  0x27   :  { %p505_p2 = scmp.ne.s32.totalorder %s730_s0, %s504_s25  ;;  %p508_p3 = scmp.lt.u32.totalorder %s504_s25, %s730_s0 }
  0x29   :  { %p510_p4 = pnand %p508_p3, %p505_p2 }
  0x2b   :  { %513 = shalt.err (!%p510_p4)
}
  0x2c   :  { %s514_s3 = scalar_lea.vmem %s20_s19, 128  ;;  %p519_p6 = scmp.lt.s32.totalorder %s20_s19, %s20_s19 }
  0x2d   :  { %p515_p5 = scmp.ne.s32.totalorder %s20_s19, %s514_s3  ;;  %p520_p7 = scmp.lt.s32.totalorder %s514_s3, %s514_s3 }
  0x2f   :  { %p521_p8 = por %p520_p7, %p519_p6 }
  0x31   :  { %p522_p9 = pnand %p521_p8, %p515_p5 }
  0x33   :  { %525 = shalt.err (!%p522_p9)
}
  0x34   :  { %25 = dma.hbm_to_vmem [thread:$0]  %s730_s0, 128, %s20_s19, [#allocation3], %s602_s30, %s602_s30, %s603_s6  }
  0x35   :  { %s526_s10 = scalar_lea.hbm %s732_s2, 16 }
  0x36   :  { %p527_p10 = scmp.ne.s32.totalorder %s732_s2, %s526_s10  ;;  %p530_p11 = scmp.lt.u32.totalorder %s526_s10, %s732_s2 }
  0x38   :  { %p532_p12 = pnand %p530_p11, %p527_p10 }
  0x3a   :  { %535 = shalt.err (!%p532_p12)
}
  0x3b   :  { %s536_s15 = scalar_lea.vmem %s45_s22, 16  ;;  %s540_s16 = scalar_lea.vmem %s45_s22, 32 }
  0x3c   :  { %p537_p13 = scmp.ne.s32.totalorder %s45_s22, %s536_s15  ;;  %p541_p0 = scmp.lt.s32.totalorder %s45_s22, %s45_s22 }
  0x3d   :  { %p542_p1 = scmp.lt.s32.totalorder %s540_s16, %s536_s15 }
  0x3f   :  { %p543_p2 = por %p542_p1, %p541_p0 }
  0x41   :  { %p544_p3 = pnand %p543_p2, %p537_p13 }
  0x43   :  { %547 = shalt.err (!%p544_p3)
}
  0x44   :  { %47 = dma.hbm_to_vmem [thread:$0]  %s732_s2, 16, %s45_s22, [#allocation6]  }
  0x45   :  { %s606_s6 = smov [#allocation10]   ;;  %s548_s19 = scalar_lea.hbm %s734_s4, 16 }
  0x46   :  { %s66_s1 = sshll.u32 %s606_s6, 4  ;;  %p549_p4 = scmp.ne.s32.totalorder %s734_s4, %s548_s19  ;;  %s67_s1 = int_to_ptr.vmem [resolvable:$true] %s66_s1 }
  0x47   :  { %p552_p5 = scmp.lt.u32.totalorder %s548_s19, %s734_s4 }
  0x49   :  { %p554_p6 = pnand %p552_p5, %p549_p4 }
  0x4b   :  { %557 = shalt.err (!%p554_p6)
}
  0x4c   :  { %s558_s26 = scalar_lea.vmem %s67_s1, 16  ;;  %s562_s2 = scalar_lea.vmem %s67_s1, 32 }
  0x4d   :  { %p559_p7 = scmp.ne.s32.totalorder %s67_s1, %s558_s26  ;;  %p563_p8 = scmp.lt.s32.totalorder %s67_s1, %s67_s1 }
  0x4e   :  { %p564_p9 = scmp.lt.s32.totalorder %s562_s2, %s558_s26 }
  0x50   :  { %p565_p10 = por %p564_p9, %p563_p8 }
  0x52   :  { %p566_p11 = pnand %p565_p10, %p559_p7 }
  0x54   :  { %569 = shalt.err (!%p566_p11)
}
  0x55   :  { %69 = dma.hbm_to_vmem [thread:$0]  %s734_s4, 16, %s67_s1, [#allocation9]  }
  0x56   :  { %592 = dma.done.wait [#allocation3], 128  }
  0x57   :  { %593 = vsyncadd [#allocation3], 4294967168 }
  0x58   :  { %594 = dma.done.wait [#allocation6], 1040  }
  0x59   :  { %595 = vsyncadd [#allocation6], 4294966256 }
  0x5a   :  { %596 = dma.done.wait [#allocation9], 1040  }
  0x5b   :  { %597 = vsyncadd [#allocation9], 4294966256  ;;  %v607_v0 = vmov 0.0   ;;  %vm608_vm0 = vmmov 0   ;;  %v439_v1 = vld [vmem:[#allocation5] sm:$0xff]   ;;  %v440_v2 = vld [vmem:[#allocation5 + $0x8] sm:$0xff]  }
  0x5c   :  { %387 = vmatprep.subr.bf16.mxu0 %v607_v0  ;;  %403 = vmatprep.mubr.msk.bf16.mxu0 %vm608_vm0, %v607_v0  ;;  %v441_v3 = vld [vmem:[#allocation5 + $0x10] sm:$0xff]   ;;  %v448_v4 = vld [vmem:[#allocation8] sm:$0xff]   ;;  %v442_v5 = vld [vmem:[#allocation5 + $0x18] sm:$0xff]   ;;  %s609_s4 = smov [#allocation11]  }
  0x5d   :  { %407 = vmatprep.subr.bf16.mxu1 %v607_v0  ;;  %423 = vmatprep.mubr.msk.bf16.mxu1 %vm608_vm0, %v607_v0  ;;  %v449_v6 = vld [vmem:[#allocation8 + $0x8] sm:$0xff]   ;;  %v443_v7 = vld [vmem:[#allocation5 + $0x20] sm:$0xff]   ;;  %v446_v10 = vld [vmem:[#allocation5 + $0x38] sm:$0xff]   ;;  %s336_s28 = sshll.u32 %s609_s4, 4  ;;  %s337_s28 = int_to_ptr.vmem [resolvable:$true] %s336_s28 }
  0x5e   :  { %388 = vmatpush3.bf16.msra.mxu0 %v439_v1  ;;  %408 = vmatpush3.bf16.msra.mxu1 %v448_v4  ;;  %v444_v8 = vld [vmem:[#allocation5 + $0x28] sm:$0xff]   ;;  %v445_v9 = vld [vmem:[#allocation5 + $0x30] sm:$0xff]   ;;  %v447_v11 = vld [vmem:[#allocation2] sm:$0xff]   ;;  %s570_s29 = scalar_lea.vmem %s337_s28, 256  ;;  %p575_p13 = scmp.lt.s32.totalorder %s337_s28, %s337_s28 }
  0x5f   :  { %389 = vmatprep.subr.bf16.mxu0 %v607_v0  ;;  %409 = vmatprep.subr.bf16.mxu1 %v607_v0  ;;  %v450_v12 = vld [vmem:[#allocation8 + $0x10] sm:$0xff]   ;;  %v451_v13 = vld [vmem:[#allocation8 + $0x18] sm:$0xff]   ;;  %v452_v14 = vld [vmem:[#allocation8 + $0x20] sm:$0xff]   ;;  %p571_p12 = scmp.ne.s32.totalorder %s337_s28, %s570_s29  ;;  %p576_p0 = scmp.lt.s32.totalorder %s570_s29, %s570_s29 }
  0x60   :  { %v453_v15 = vld [vmem:[#allocation8 + $0x28] sm:$0xff]   ;;  %v454_v16 = vld [vmem:[#allocation8 + $0x30] sm:$0xff]   ;;  %v455_v17 = vld [vmem:[#allocation8 + $0x38] sm:$0xff]  }
  0x61   :  { %v350_v18 = vld [vmem:[#allocation7] ss:$0 sm:$0xff]  ;;  %v360_v36 = vld [vmem:[#allocation10] ss:$0 sm:$0xff]  ;;  %p577_p1 = por %p576_p0, %p575_p13 }
  0x62   :  { %390 = vmatpush3.bf16.msra.mxu0 %v440_v2  ;;  %410 = vmatpush3.bf16.msra.mxu1 %v449_v6 }
  0x63   :  { %391 = vmatprep.subr.bf16.mxu0 %v607_v0  ;;  %411 = vmatprep.subr.bf16.mxu1 %v607_v0  ;;  %p578_p2 = pnand %p577_p1, %p571_p12 }
  0x66   :  { %392 = vmatpush3.bf16.msra.mxu0 %v441_v3  ;;  %412 = vmatpush3.bf16.msra.mxu1 %v450_v12 }
  0x67   :  { %393 = vmatprep.subr.bf16.mxu0 %v607_v0  ;;  %413 = vmatprep.subr.bf16.mxu1 %v607_v0 }
  0x6a   :  { %394 = vmatpush3.bf16.msra.mxu0 %v442_v5  ;;  %414 = vmatpush3.bf16.msra.mxu1 %v451_v13 }
  0x6b   :  { %395 = vmatprep.subr.bf16.mxu0 %v607_v0  ;;  %415 = vmatprep.subr.bf16.mxu1 %v607_v0 }
  0x6e   :  { %396 = vmatpush3.bf16.msra.mxu0 %v443_v7  ;;  %416 = vmatpush3.bf16.msra.mxu1 %v452_v14 }
  0x6f   :  { %397 = vmatprep.subr.bf16.mxu0 %v607_v0  ;;  %417 = vmatprep.subr.bf16.mxu1 %v607_v0 }
  0x72   :  { %398 = vmatpush3.bf16.msra.mxu0 %v444_v8  ;;  %418 = vmatpush3.bf16.msra.mxu1 %v453_v15 }
  0x73   :  { %399 = vmatprep.subr.bf16.mxu0 %v607_v0  ;;  %419 = vmatprep.subr.bf16.mxu1 %v607_v0 }
  0x76   :  { %400 = vmatpush3.bf16.msra.mxu0 %v445_v9  ;;  %420 = vmatpush3.bf16.msra.mxu1 %v454_v16 }
  0x77   :  { %401 = vmatprep.subr.bf16.mxu0 %v607_v0  ;;  %421 = vmatprep.subr.bf16.mxu1 %v607_v0 }
  0x7a   :  { %402 = vmatpush3.bf16.msra.mxu0 %v446_v10  ;;  %422 = vmatpush3.bf16.msra.mxu1 %v455_v17 }
  0x7d   :  { %404 = vmatmul.mubr.bf16.vlgmr.msra.gmra.mrb[0].mxu0 %v447_v11 }
 0x150   :  { %v199_v19 = vpop.f32.mrb[0].mxu0 }
 0x151   :  { %v200_v20 = vadd.f32 %v350_v18, %v199_v19  ;;  %v405_v21 = vpop.f32.mrb[1].mxu0 }
 0x152   :  { %v202_v22 = vpop.f32.mrb[2].mxu0 }
 0x153   :  { %v208_v23 = vmul.f32 0.70710677, %v200_v20  ;;  %v203_v24 = vadd.f32 %v350_v18, %v202_v22  ;;  %v406_v25 = vpop.f32.mrb[3].mxu0  ;;  %v206_v30 = vmul.f32 0.5, %v200_v20 }
 0x155   :  { %456 = verf.f32 %v208_v23  ;;  %v209_v26 = vmul.f32 0.70710677, %v203_v24  ;;  %v207_v31 = vmul.f32 0.5, %v203_v24 }
 0x157   :  { %458 = verf.f32 %v209_v26 }
 0x15f   :  { %v457_v27 = vpop.eup %456 }
 0x160   :  { %v212_v28 = vadd.f32 1.0, %v457_v27 }
 0x161   :  { %v459_v29 = vpop.eup %458 }
 0x162   :  { %v213_v32 = vadd.f32 1.0, %v459_v29  ;;  %v214_v33 = vmul.f32 %v212_v28, %v206_v30 }
 0x164   :  { %v215_v34 = vmul.f32 %v213_v32, %v207_v31 }
 0x166   :  { %v216_v35 = vpack.c.bf16 %v215_v34, %v214_v33 }
 0x168   :  { %424 = vmatmul.mubr.bf16.vlgmr.msra.gmra.mrb[0].mxu1 %v216_v35 }
 0x23b   :  { %v322_v37 = vpop.f32.mrb[0].mxu1 }
 0x23c   :  { %v323_v38 = vadd.f32 %v360_v36, %v322_v37  ;;  %v425_v39 = vpop.f32.mrb[1].mxu1 }
 0x23d   :  { %v325_v40 = vpop.f32.mrb[2].mxu1 }
 0x23e   :  { %329 = vst [vmem:[#allocation11] sm:$0xff] %v323_v38  ;;  %v326_v41 = vadd.f32 %v360_v36, %v325_v40  ;;  %v426_v42 = vpop.f32.mrb[3].mxu1 }
 0x240   :  { %330 = vst [vmem:[#allocation11 + $0x8] sm:$0xff] %v326_v41 }
 0x241   :  { %581 = shalt.err (!%p578_p2)
}
 0x242   :  { %s582_s7 = scalar_lea.hbm %s735_s5, 256 }
 0x243   :  { %p583_p3 = scmp.ne.s32.totalorder %s735_s5, %s582_s7  ;;  %p586_p4 = scmp.lt.u32.totalorder %s582_s7, %s735_s5 }
 0x245   :  { %p588_p5 = pnand %p586_p4, %p583_p3 }
 0x247   :  { %591 = shalt.err (!%p588_p5)
}
 0x248   :  { %s610_s12 = smov 128   ;;  %s611_s13 = smov 8  }
 0x249   :  { %342 = dma.vmem_to_hbm [thread:$0]  %s337_s28, 256, %s735_s5, [#allocation4], %s610_s12, %s610_s12, %s611_s13  }
 0x24a   :  { %598 = dma.done.wait [#allocation4], 256  }
 0x24b   :  { %599 = vsyncadd [#allocation4], 4294967040 }
 0x24c   :  { %346 = vsyncpa [#allocation3], 1 }
 0x24d   :  { %347 = vsyncpa [#allocation6], 1 }
 0x24e   :  { %348 = vsyncpa [#allocation9], 1 }
 0x24f   :  { %349 = vsyncpa [#allocation4], 1 }

</bundles_post_ra>
